<compile_context>
chip_gen: v6e
topology: v6e:2x2x1
jax: 0.10.0
libtpu: 0.0.40
codegen_flags: <defaults>
</compile_context>

<pallas_src>
import numpy as np
import jax
import jax.numpy as jnp
from jax import lax
from jax.experimental import pallas as pl
from jax.experimental.pallas import tpu as pltpu


# ----------------------------- config ---------------------------------------
class Config:
    image_size = 16
    patch_size = 4
    num_channels = 4
    hidden_size = 32
    mask_ratio = 0.75
    object_mask_ratio = 0.0      # object-aware path disabled (see TODO below)
    initializer_range = 0.02


# -------------------- sincos position embeddings (HF impl) ------------------
def get_1d_sincos_pos_embed_from_grid(embed_dim, pos):
    omega = np.arange(embed_dim // 2, dtype=np.float64)
    omega /= embed_dim / 2.0
    omega = 1.0 / 10000 ** omega
    pos = pos.reshape(-1)
    out = np.einsum("m,d->md", pos, omega)
    return np.concatenate([np.sin(out), np.cos(out)], axis=1)


def get_2d_sincos_pos_embed(embed_dim, grid_size, add_cls_token=False):
    grid_h = np.arange(grid_size, dtype=np.float32)
    grid_w = np.arange(grid_size, dtype=np.float32)
    grid = np.meshgrid(grid_w, grid_h)          # w goes first (HF convention)
    grid = np.stack(grid, axis=0).reshape([2, 1, grid_size, grid_size])
    emb_h = get_1d_sincos_pos_embed_from_grid(embed_dim // 2, grid[0])
    emb_w = get_1d_sincos_pos_embed_from_grid(embed_dim // 2, grid[1])
    pos_embed = np.concatenate([emb_h, emb_w], axis=1)
    if add_cls_token:
        pos_embed = np.concatenate([np.zeros([1, embed_dim]), pos_embed], axis=0)
    return pos_embed.astype(np.float32)


# ------------------------------ Pallas kernel --------------------------------
def _embed_kernel(x_ref, w_ref, ids_ref, tab_ref, out_ref):
    # Patch projection on the MXU: bf16 operands, f32 accumulation.
    proj = jnp.dot(x_ref[...], w_ref[...], preferred_element_type=jnp.float32)

    # Per-token additive term (pos_embed + bias, or cls_token + pos[0] for CLS
    # rows) gathered from the VMEM-resident table.  Implemented as an exact
    # one-hot f32 matmul (0/1 selector) so no dynamic-gather lowering is
    # needed; the extra MXU work hides under the mem-bound pipeline.
    ids = ids_ref[...]                                            # (TM, 1) int32
    cols = lax.broadcasted_iota(jnp.int32, (ids.shape[0], tab_ref.shape[0]), 1)
    onehot = (ids == cols).astype(jnp.float32)                    # (TM, NP1_pad)
    add = jnp.dot(onehot, tab_ref[...], preferred_element_type=jnp.float32)

    out_ref[...] = (proj + add).astype(out_ref.dtype)


def _round_up(x, m):
    return ((x + m - 1) // m) * m


# ------------------------------ forward wrapper -------------------------------
def vit_mae_embeddings_forward(pixel_values, params, config, noise):
    """Returns (embeddings, mask, ids_restore) matching the PyTorch module."""
    B, C, H, W = pixel_values.shape
    P = config.patch_size
    Hp, Wp = H // P, W // P
    N = Hp * Wp
    D = C * P * P
    hidden = config.hidden_size

    # --- glue: patch extraction (matches Conv2d stride=patch then flatten/transpose)
    x = pixel_values.reshape(B, C, Hp, P, Wp, P)
    x = x.transpose(0, 2, 4, 1, 3, 5).reshape(B * N, D)              # [B*N, D]
    x_flat = x.astype(jnp.bfloat16)        # bf16 operands; f32 accumulate in-kernel

    # --- glue: random masking index math (argsort has no clean Pallas equivalent)
    len_keep = int(N * (1 - config.mask_ratio))
    ids_shuffle = jnp.argsort(noise, axis=1)
    ids_restore = jnp.argsort(ids_shuffle, axis=1)
    ids_keep = ids_shuffle[:, :len_keep].astype(jnp.int32)
    # equivalent to torch: ones, zero first len_keep, gather by ids_restore
    mask = (ids_restore >= len_keep).astype(jnp.float32)

    L1 = len_keep + 1                       # CLS + kept patches per batch
    M = B * L1                              # total tokens across the batch

    # --- padded dims (lane-dense output, MXU-friendly table K dim)
    H_pad = max(_round_up(hidden, 128), 128)
    NP1_pad = _round_up(N + 1, 128)

    # --- row-tile choice: biggest tile in budget; >= 2 grid steps when M allows
    # it (v7x dual-TensorCore); multiples of 16 for bf16 sublane packing.
    if M >= 1024:
        TM = 512
    elif M >= 512:
        TM = 256
    elif M >= 256:
        TM = 128
    else:
        TM = _round_up(M, 16)
    M_pad = _round_up(M, TM)

    # --- per-token source row (into the flat patch slab) and additive-table row.
    # Single fused gather with fill builds the padded bf16 kernel input directly:
    # CLS rows and pad rows become exact zero rows (0 @ W == 0).
    tok = jnp.arange(M_pad, dtype=jnp.int32)
    b_idx = jnp.where(tok >= M, 0, tok // L1).astype(jnp.int32)
    p_idx = tok % L1
    is_cls = p_idx == 0
    is_zero_row = is_cls | (tok >= M)
    patch_id = ids_keep[b_idx, jnp.maximum(p_idx - 1, 0)]            # (M_pad,)
    oob = jnp.int32(B * N)                                           # out-of-range marker
    src_row = jnp.where(is_zero_row, oob, b_idx * N + patch_id)
    add_row = jnp.where(is_zero_row, 0, patch_id + 1).astype(jnp.int32)[:, None]

    x_tok = jnp.take(x_flat, src_row, axis=0, mode="fill", fill_value=0)   # (M_pad, D) bf16

    # --- additive table: row 0 = cls_token + pos[0]; rows 1..N = pos[1:] + bias.
    pos = params["pos_embed"]                                        # (N+1, hidden) f32
    bias = params["proj_b"]                                          # (hidden,)
    tab = jnp.concatenate(
        [params["cls_token"].reshape(1, hidden) + pos[:1, :],
         pos[1:, :] + bias[None, :]], axis=0)                        # (N+1, hidden)
    tab = jnp.pad(tab, ((0, NP1_pad - (N + 1)), (0, H_pad - hidden)))  # f32, VMEM-resident

    # --- projection weight, lane-padded, bf16
    w_mat = params["proj_w"].reshape(hidden, D).T                    # (D, hidden)
    w_mat = jnp.pad(w_mat, ((0, 0), (0, H_pad - hidden))).astype(jnp.bfloat16)

    out2d = pl.pallas_call(
        _embed_kernel,
        out_shape=jax.ShapeDtypeStruct((M_pad, H_pad), jnp.float32),
        grid=(M_pad // TM,),
        in_specs=[
            pl.BlockSpec((TM, D), lambda i: (i, 0)),                  # x tokens (bf16)
            pl.BlockSpec((D, H_pad), lambda i: (0, 0),                # weight, fetched once
                         pipeline_mode=pl.Buffered(1)),
            pl.BlockSpec((TM, 1), lambda i: (i, 0)),                  # per-row table ids
            pl.BlockSpec((NP1_pad, H_pad), lambda i: (0, 0),          # additive table (f32)
                         pipeline_mode=pl.Buffered(1)),
        ],
        out_specs=pl.BlockSpec((TM, H_pad), lambda i: (i, 0)),
        compiler_params=pltpu.CompilerParams(
            dimension_semantics=("parallel",),
            vmem_limit_bytes=32 * 1024 * 1024),
    )(x_tok, w_mat, add_row, tab)

    out = out2d[:M, :hidden].reshape(B, L1, hidden)

    # TODO(synk): object_aware_sampling (per-sample nonzero/randperm python loop)
    # and F.interpolate of object_mask are not implemented; object_mask=None path only.
    return out, mask, ids_restore


# ------------------------------ parameter init --------------------------------
def init_params(config, key):
    hidden = config.hidden_size
    P = config.patch_size
    C = config.num_channels
    grid_size = config.image_size // P
    num_patches = grid_size * grid_size
    D = C * P * P

    k_cls, k_w, k_b = jax.random.split(key, 3)

    # cls token ~ N(0, initializer_range)
    cls_token = config.initializer_range * jax.random.normal(
        k_cls, (1, 1, hidden), dtype=jnp.float32)

    # conv projection weight: xavier_uniform_ on the [hidden, C*P*P] view
    bound = float(np.sqrt(6.0 / (hidden + D)))
    proj_w = jax.random.uniform(k_w, (hidden, C, P, P), dtype=jnp.float32,
                                minval=-bound, maxval=bound)
    # conv bias: PyTorch default uniform(-1/sqrt(fan_in), 1/sqrt(fan_in))
    fan_in_bound = 1.0 / float(np.sqrt(D))
    proj_b = jax.random.uniform(k_b, (hidden,), dtype=jnp.float32,
                                minval=-fan_in_bound, maxval=fan_in_bound)

    pos_embed = jnp.asarray(
        get_2d_sincos_pos_embed(hidden, grid_size, add_cls_token=True))

    return {
        "cls_token": cls_token,
        "proj_w": proj_w,
        "proj_b": proj_b,
        "pos_embed": pos_embed,      # [num_patches + 1, hidden]
    }, num_patches


# ------------------------------ reference (pure JAX) ---------------------------
def reference_forward(pixel_values, params, config, noise, cast_inputs_to_bf16=False):
    B, C, H, W = pixel_values.shape
    P = config.patch_size
    Hp, Wp = H // P, W // P
    N = Hp * Wp
    D = C * P * P
    hidden = config.hidden_size

    x = pixel_values.reshape(B, C, Hp, P, Wp, P)
    x = x.transpose(0, 2, 4, 1, 3, 5).reshape(B, N, D)
    w_mat = params["proj_w"].reshape(hidden, D).T
    if cast_inputs_to_bf16:
        x = x.astype(jnp.bfloat16).astype(jnp.float32)
        w_mat = w_mat.astype(jnp.bfloat16).astype(jnp.float32)
    emb = x @ w_mat + params["proj_b"][None, None, :] + params["pos_embed"][None, 1:, :]

    len_keep = int(N * (1 - config.mask_ratio))
    ids_shuffle = jnp.argsort(noise, axis=1)
    ids_restore = jnp.argsort(ids_shuffle, axis=1)
    ids_keep = ids_shuffle[:, :len_keep]
    kept = jnp.take_along_axis(emb, ids_keep[..., None], axis=1)
    mask = (ids_restore >= len_keep).astype(jnp.float32)

    cls_tok = params["cls_token"] + params["pos_embed"][None, :1, :]
    cls_tokens = jnp.broadcast_to(cls_tok, (B, 1, hidden))
    out = jnp.concatenate([cls_tokens, kept], axis=1)
    return out, mask, ids_restore


# ---------------------------------- main --------------------------------------
if __name__ == "__main__":
    config = Config()
    key = jax.random.PRNGKey(0)
    k_params, k_pix, k_noise = jax.random.split(key, 3)

    params, num_patches = init_params(config, k_params)

    B = 2
    pixel_values = jax.random.normal(
        k_pix, (B, config.num_channels, config.image_size, config.image_size),
        dtype=jnp.float32)
    noise = jax.random.uniform(k_noise, (B, num_patches), dtype=jnp.float32)

    emb, mask, ids_restore = vit_mae_embeddings_forward(
        pixel_values, params, config, noise)
    jax.block_until_ready((emb, mask, ids_restore))

    # f32 module reference (semantic check, loose tolerance for the bf16 operand cast)
    ref_emb, ref_mask, ref_ids = reference_forward(
        pixel_values, params, config, noise)
    # reference with the same bf16 input rounding (tight check of kernel math)
    ref_emb_b, _, _ = reference_forward(
        pixel_values, params, config, noise, cast_inputs_to_bf16=True)

    assert emb.shape == ref_emb.shape, (emb.shape, ref_emb.shape)
    assert jnp.allclose(emb, ref_emb_b, atol=2e-3, rtol=2e-3), "embeddings mismatch (bf16-cast ref)"
    assert jnp.allclose(emb, ref_emb, atol=5e-2, rtol=5e-2), "embeddings mismatch (f32 ref)"
    assert jnp.array_equal(mask, ref_mask), "mask mismatch"
    assert jnp.array_equal(ids_restore, ref_ids), "ids_restore mismatch"

    print("KERNEL_OK")
</pallas_src>

<mosaic_0001>
module attributes {stable_mosaic.version = 11 : i64} {
  func.func @_embed_kernel(%arg0: i32, %arg1: memref<16x64xbf16, #tpu.memory_space<vmem>>, %arg2: memref<64x128xbf16, #tpu.memory_space<vmem>>, %arg3: memref<16x1xi32, #tpu.memory_space<vmem>>, %arg4: memref<128x128xf32, #tpu.memory_space<vmem>>, %arg5: memref<16x128xf32, #tpu.memory_space<vmem>>) attributes {dimension_semantics = [#tpu.dimension_semantics<parallel>], iteration_bounds = array<i64: 1>, scalar_prefetch = 0 : i64, scratch_operands = 0 : i64, tpu.core_type = #tpu.core_type<tc>, window_params = [{transform_indices = @transform_0, window_bounds = array<i64: 16, 64>}, {pipeline_mode = #tpu.pipeline_mode<synchronous>, transform_indices = @transform_1, window_bounds = array<i64: 64, 128>}, {transform_indices = @transform_2, window_bounds = array<i64: 16, 1>}, {pipeline_mode = #tpu.pipeline_mode<synchronous>, transform_indices = @transform_3, window_bounds = array<i64: 128, 128>}, {transform_indices = @transform_4, window_bounds = array<i64: 16, 128>}]} {
    %c0 = arith.constant 0 : index
    %c0_0 = arith.constant 0 : index
    %0 = vector.load %arg1[%c0, %c0_0] : memref<16x64xbf16, #tpu.memory_space<vmem>>, vector<16x64xbf16>
    %c0_1 = arith.constant 0 : index
    %c0_2 = arith.constant 0 : index
    %1 = vector.load %arg2[%c0_1, %c0_2] : memref<64x128xbf16, #tpu.memory_space<vmem>>, vector<64x128xbf16>
    %cst = arith.constant dense<0.000000e+00> : vector<16x128xf32>
    %2 = tpu.matmul %0, %1, %cst {dimension_numbers = #tpu.dot_dimension_numbers<[1], [0], [0], [1], [0, 0, 1, 1], [], []>} : vector<16x64xbf16>, vector<64x128xbf16>, vector<16x128xf32> -> vector<16x128xf32>
    %c0_3 = arith.constant 0 : index
    %c0_4 = arith.constant 0 : index
    %3 = vector.load %arg3[%c0_3, %c0_4] : memref<16x1xi32, #tpu.memory_space<vmem>>, vector<16x1xi32>
    %4 = tpu.iota {dimensions = array<i32: 1>} : vector<16x128xi32>
    %5 = vector.broadcast %3 : vector<16x1xi32> to vector<16x128xi32>
    %6 = arith.cmpi eq, %5, %4 : vector<16x128xi32>
    %7 = arith.extui %6 : vector<16x128xi1> to vector<16x128xi32>
    %8 = arith.sitofp %7 : vector<16x128xi32> to vector<16x128xf32>
    %c0_5 = arith.constant 0 : index
    %c0_6 = arith.constant 0 : index
    %9 = vector.load %arg4[%c0_5, %c0_6] : memref<128x128xf32, #tpu.memory_space<vmem>>, vector<128x128xf32>
    %cst_7 = arith.constant dense<0.000000e+00> : vector<16x128xf32>
    %10 = tpu.matmul %8, %9, %cst_7 {dimension_numbers = #tpu.dot_dimension_numbers<[1], [0], [0], [1], [0, 0, 1, 1], [], []>} : vector<16x128xf32>, vector<128x128xf32>, vector<16x128xf32> -> vector<16x128xf32>
    %11 = arith.addf %2, %10 : vector<16x128xf32>
    %c0_8 = arith.constant 0 : index
    %c0_9 = arith.constant 0 : index
    %12 = vector.load %arg5[%c0_8, %c0_9] : memref<16x128xf32, #tpu.memory_space<vmem>>, vector<16x128xf32>
    tpu.vector_store %arg5[%c0_8, %c0_9], %11 {strides = array<i32>} : memref<16x128xf32, #tpu.memory_space<vmem>>, vector<16x128xf32>,
    return
  }
  func.func @transform_0(%arg0: i32) -> (i32, i32) {
    %c0_i32 = arith.constant 0 : i32
    %c0_i32_0 = arith.constant 0 : i32
    return %arg0, %c0_i32 : i32, i32
  }
  func.func @transform_1(%arg0: i32) -> (i32, i32) {
    %c0_i32 = arith.constant 0 : i32
    %c0_i32_0 = arith.constant 0 : i32
    %c0_i32_1 = arith.constant 0 : i32
    return %c0_i32, %c0_i32_0 : i32, i32
  }
  func.func @transform_2(%arg0: i32) -> (i32, i32) {
    %c0_i32 = arith.constant 0 : i32
    %c0_i32_0 = arith.constant 0 : i32
    return %arg0, %c0_i32 : i32, i32
  }
  func.func @transform_3(%arg0: i32) -> (i32, i32) {
    %c0_i32 = arith.constant 0 : i32
    %c0_i32_0 = arith.constant 0 : i32
    %c0_i32_1 = arith.constant 0 : i32
    return %c0_i32, %c0_i32_0 : i32, i32
  }
  func.func @transform_4(%arg0: i32) -> (i32, i32) {
    %c0_i32 = arith.constant 0 : i32
    %c0_i32_0 = arith.constant 0 : i32
    return %arg0, %c0_i32 : i32, i32
  }
}

</mosaic_0001>

<bundles_post_ra>
// kernel: tpu_custom_call.1
= control target key start
LH: loop header
LB: loop body
LE: loop exit
PB: predicated region body
PF: predicated region fallthrough
CT: control target
= control target key end

     0   :  { %9 = vsyncpa [#allocation3], 0  ;;  %s481_s0 = inlined_call_operand.vmem [shape: bf16[16,64], index: 0, kind: input, shape index: {}]   ;;  %s482_s1 = inlined_call_operand.hbm [shape: bf16[64,128], index: 1, kind: input, shape index: {}]   ;;  %s483_s2 = inlined_call_operand.vmem [shape: s32[16,1], index: 2, kind: input, shape index: {}]   ;;  %s484_s3 = inlined_call_operand.hbm [shape: f32[128,128], index: 3, kind: input, shape index: {}]   ;;  %s485_s4 = inlined_call_operand.hbm [shape: f32[16,128], index: 4, kind: output, shape index: {}]  }
   0x1   :  { %10 = vsyncpa [#allocation6], 0 }
   0x2   :  { %11 = vsyncpa [#allocation4], 0  ;;  %s421_s15 = smov [#allocation2]  }
   0x3   :  { %s19_s16 = sshll.u32 %s421_s15, 4  ;;  %s20_s16 = int_to_ptr.vmem [resolvable:$true] %s19_s16 }
   0x4   :  { %s363_s17 = scalar_lea.vmem %s20_s16, 512  ;;  %p368_p1 = scmp.lt.s32.totalorder %s20_s16, %s20_s16 }
   0x5   :  { %p364_p0 = scmp.ne.s32.totalorder %s20_s16, %s363_s17  ;;  %p369_p2 = scmp.lt.s32.totalorder %s363_s17, %s363_s17 }
   0x7   :  { %p370_p3 = por %p369_p2, %p368_p1 }
   0x9   :  { %p371_p4 = pnand %p370_p3, %p364_p0 }
   0xb   :  { %374 = shalt.err (!%p371_p4)
}
   0xc   :  { %s422_s18 = smov 64   ;;  %s423_s19 = smov 4  }
   0xd   :  { %25 = dma.hbm_to_vmem [thread:$0]  %s482_s1, 512, %s20_s16, [#allocation3], %s422_s18, %s422_s18, %s423_s19  }
   0xe   :  { %s424_s22 = smov [#allocation5]  }
   0xf   :  { %s33_s23 = sshll.u32 %s424_s22, 4  ;;  %s34_s23 = int_to_ptr.vmem [resolvable:$true] %s33_s23 }
  0x10   :  { %s383_s24 = scalar_lea.vmem %s34_s23, 2048  ;;  %p388_p6 = scmp.lt.s32.totalorder %s34_s23, %s34_s23 }
  0x11   :  { %p384_p5 = scmp.ne.s32.totalorder %s34_s23, %s383_s24  ;;  %p389_p7 = scmp.lt.s32.totalorder %s383_s24, %s383_s24 }
  0x13   :  { %p390_p8 = por %p389_p7, %p388_p6 }
  0x15   :  { %p391_p9 = pnand %p390_p8, %p384_p5 }
  0x17   :  { %394 = shalt.err (!%p391_p9)
}
  0x18   :  { %s425_s25 = smov 128   ;;  %s426_s26 = smov 8  }
  0x19   :  { %39 = dma.hbm_to_vmem [thread:$0]  %s484_s3, 2048, %s34_s23, [#allocation6], %s425_s25, %s425_s25, %s426_s26  }
  0x1a   :  { %415 = dma.done.wait [#allocation3], 512  }
  0x1b   :  { %416 = vsyncadd [#allocation3], 4294966784 }
  0x1c   :  { %417 = dma.done.wait [#allocation6], 2048  }
  0x1d   :  { %418 = vsyncadd [#allocation6], 4294965248  ;;  %v427_v0 = vmov 0   ;;  %v428_v1 = vmov 0.0   ;;  %vm429_vm0 = vmmov 0   ;;  %v57_v2 = vld [vmem:[%s483_s2] sm:$0xff]  ;;  %v59_v25 = vlaneseq }
  0x1e   :  { %349 = vset.pattern.permute.xlu0 %v427_v0  ;;  %326 = vmatprep.subr.bf16.mxu1 %v428_v1  ;;  %v88_v3 = vld [vmem:[#allocation5 + $0x78] sm:$0xff]  ;;  %v58_v4 = vld [vmem:[%s483_s2 + $0x8] sm:$0xff]  ;;  %v87_v5 = vld [vmem:[#allocation5 + $0x70] sm:$0xff]  ;;  %vm193_vm1 = vcmask 523264   ;;  %v430_v28 = vmov 1.0  }
  0x1f   :  { %334 = vmatprep.mubr.msk.bf16.mxu1 %vm429_vm0, %v428_v1  ;;  %62 = vperm.xlu0 %349, %v57_v2   ;;  %v86_v6 = vld [vmem:[#allocation5 + $0x68] sm:$0xff]  ;;  %v350_v7 = vld [vmem:[#allocation2 + $0x18] sm:$0xff]   ;;  %v85_v8 = vld [vmem:[#allocation5 + $0x60] sm:$0xff]  ;;  %v60_v26 = vand.u32 127, %v59_v25 }
  0x20   :  { %291 = vmatprep.subr.mxu0 %v88_v3  ;;  %v84_v9 = vld [vmem:[#allocation5 + $0x58] sm:$0xff]  ;;  %327 = vmatpush3.bf16.msra.mxu1 %v350_v7  ;;  %v351_v10 = vld [vmem:[#allocation2 + $0x10] sm:$0xff]   ;;  %v82_v12 = vld [vmem:[#allocation5 + $0x48] sm:$0xff] }
  0x21   :  { %292 = vmatpush3.msra.mxu0 %v88_v3  ;;  %328 = vmatprep.subr.bf16.mxu1 %v428_v1  ;;  %v83_v11 = vld [vmem:[#allocation5 + $0x50] sm:$0xff]  ;;  %v352_v13 = vld [vmem:[#allocation2 + $0x8] sm:$0xff]   ;;  %v81_v14 = vld [vmem:[#allocation5 + $0x40] sm:$0xff] }
  0x22   :  { %293 = vmatprep.subr.mxu0 %v87_v5  ;;  %v80_v15 = vld [vmem:[#allocation5 + $0x38] sm:$0xff]  ;;  %v353_v16 = vld [vmem:[#allocation2] sm:$0xff]   ;;  %v79_v17 = vld [vmem:[#allocation5 + $0x30] sm:$0xff] }
  0x23   :  { %294 = vmatpush3.msra.mxu0 %v87_v5  ;;  %65 = vperm.xlu0 %349, %v58_v4   ;;  %v354_v18 = vld [vmem:[%s481_s0] sm:$0xff]   ;;  %v78_v19 = vld [vmem:[#allocation5 + $0x28] sm:$0xff]  ;;  %v76_v21 = vld [vmem:[#allocation5 + $0x18] sm:$0xff]  ;;  %s431_s0 = smov [#allocation7]  }
  0x24   :  { %295 = vmatprep.subr.mxu0 %v86_v6  ;;  %329 = vmatpush3.bf16.msra.mxu1 %v351_v10  ;;  %v77_v20 = vld [vmem:[#allocation5 + $0x20] sm:$0xff]  ;;  %v75_v22 = vld [vmem:[#allocation5 + $0x10] sm:$0xff]  ;;  %v74_v23 = vld [vmem:[#allocation5 + $0x8] sm:$0xff]  ;;  %s245_s6 = sshll.u32 %s431_s0, 4  ;;  %s246_s6 = int_to_ptr.vmem [resolvable:$true] %s245_s6 }
  0x25   :  { %296 = vmatpush3.msra.mxu0 %v86_v6  ;;  %330 = vmatprep.subr.bf16.mxu1 %v428_v1  ;;  %v73_v24 = vld [vmem:[#allocation5] sm:$0xff]  ;;  %s395_s7 = scalar_lea.vmem %s246_s6, 256  ;;  %p400_p11 = scmp.lt.s32.totalorder %s246_s6, %s246_s6 }
  0x26   :  { %297 = vmatprep.subr.mxu0 %v85_v8  ;;  %p396_p10 = scmp.ne.s32.totalorder %s246_s6, %s395_s7  ;;  %p401_p12 = scmp.lt.s32.totalorder %s395_s7, %s395_s7 }
  0x27   :  { %298 = vmatpush3.msra.mxu0 %v85_v8 }
  0x28   :  { %299 = vmatprep.subr.mxu0 %v84_v9  ;;  %331 = vmatpush3.bf16.msra.mxu1 %v352_v13  ;;  %p402_p13 = por %p401_p12, %p400_p11 }
  0x29   :  { %300 = vmatpush3.msra.mxu0 %v84_v9  ;;  %332 = vmatprep.subr.bf16.mxu1 %v428_v1 }
  0x2a   :  { %301 = vmatprep.subr.mxu0 %v83_v11  ;;  %p403_p0 = pnand %p402_p13, %p396_p10 }
  0x2b   :  { %302 = vmatpush3.msra.mxu0 %v83_v11 }
  0x2c   :  { %303 = vmatprep.subr.mxu0 %v82_v12  ;;  %333 = vmatpush3.bf16.msra.mxu1 %v353_v16 }
  0x2d   :  { %304 = vmatpush3.msra.mxu0 %v82_v12 }
  0x2e   :  { %305 = vmatprep.subr.mxu0 %v81_v14 }
  0x2f   :  { %306 = vmatpush3.msra.mxu0 %v81_v14  ;;  %335 = vmatmul.mubr.msk.bf16.vlgmr.msra.gmra.mxu1 %vm193_vm1, %v354_v18 }
  0x30   :  { %307 = vmatprep.subr.mxu0 %v80_v15 }
  0x31   :  { %308 = vmatpush3.msra.mxu0 %v80_v15 }
  0x32   :  { %309 = vmatprep.subr.mxu0 %v79_v17 }
  0x33   :  { %310 = vmatpush3.msra.mxu0 %v79_v17 }
  0x34   :  { %311 = vmatprep.subr.mxu0 %v78_v19 }
  0x35   :  { %312 = vmatpush3.msra.mxu0 %v78_v19 }
  0x36   :  { %313 = vmatprep.subr.mxu0 %v77_v20 }
  0x37   :  { %314 = vmatpush3.msra.mxu0 %v77_v20 }
  0x38   :  { %315 = vmatprep.subr.mxu0 %v76_v21 }
  0x39   :  { %316 = vmatpush3.msra.mxu0 %v76_v21 }
  0x3a   :  { %317 = vmatprep.subr.mxu0 %v75_v22 }
  0x3b   :  { %318 = vmatpush3.msra.mxu0 %v75_v22 }
  0x3c   :  { %319 = vmatprep.subr.mxu0 %v74_v23 }
  0x3d   :  { %320 = vmatpush3.msra.mxu0 %v74_v23 }
  0x3e   :  { %321 = vmatprep.subr.mxu0 %v73_v24 }
  0x3f   :  { %322 = vmatpush3.msra.mxu0 %v73_v24 }
  0x9a   :  { %v63_v27 = vpop.permute.xlu0 %62 }
  0x9b   :  { %vm67_vm2 = vcmp.eq.s32.totalorder %v63_v27, %v60_v26 }
  0x9c   :  { %323 = vmatprep.mubr.msk.f32.mxu0 %vm67_vm2, %v430_v28 }
  0x9e   :  { %v66_v29 = vpop.permute.xlu0 %65 }
  0x9f   :  { %vm68_vm3 = vcmp.eq.s32.totalorder %v66_v29, %v60_v26 }
  0xa0   :  { %324 = vmatmul.mubr.msk.f32.vlgmr.msra.gmra.mxu0 %vm68_vm3, %v430_v28 }
  0xef   :  { %v231_v30 = vpop.f32.mrf.mxu1 }
  0xf1   :  { %v336_v31 = vpop.f32.mrf.mxu1 }
  0xf3   :  { %v234_v32 = vpop.f32.mrf.mxu1 }
  0xf5   :  { %v337_v33 = vpop.f32.mrf.mxu1 }
 0x160   :  { %v325_v34 = vpop.f32.mrf.mxu0 }
 0x161   :  { %v235_v35 = vadd.f32 %v325_v34, %v234_v32 }
 0x162   :  { %v155_v36 = vpop.f32.mrf.mxu0 }
 0x163   :  { %239 = vst [vmem:[#allocation7 + $0x8] sm:$0xff] %v235_v35  ;;  %v232_v37 = vadd.f32 %v231_v30, %v155_v36 }
 0x165   :  { %238 = vst [vmem:[#allocation7] sm:$0xff] %v232_v37 }
 0x166   :  { %406 = shalt.err (!%p403_p0)
}
 0x167   :  { %251 = dma.vmem_to_hbm [thread:$0]  %s246_s6, 256, %s485_s4, [#allocation4], %s425_s25, %s425_s25, %s426_s26  }
 0x168   :  { %419 = dma.done.wait [#allocation4], 256  }
 0x169   :  { %420 = vsyncadd [#allocation4], 4294967040 }
 0x16a   :  { %255 = vsyncpa [#allocation3], 1 }
 0x16b   :  { %256 = vsyncpa [#allocation6], 1 }
 0x16c   :  { %257 = vsyncpa [#allocation4], 1 }

</bundles_post_ra>
